<compile_context>
chip_gen: v7x
topology: tpu7x:2x2x1
jax: 0.10.0
libtpu: 0.0.40
codegen_flags: <defaults>
</compile_context>

<pallas_src>
import functools

import jax
import jax.numpy as jnp
from jax.experimental import pallas as pl
from jax.experimental.pallas import tpu as pltpu

_LANES = 128


def _age_loss_kernel(la_ref, out_ref, lbl_ref, loss_ref, acc_ref, *,
                     neg_inv_two_sigma_sq, inv_n):
    i = pl.program_id(0)

    @pl.when(i == 0)
    def _init():
        acc_ref[...] = jnp.zeros_like(acc_ref)

    # Scalar mixing coefficient from SMEM; hoist the MSE weight once.
    la = la_ref[0]
    c_mse = (1.0 - la) * 0.5

    # Cast in VMEM (free relative to the DMA); inputs may be bf16/f16/f32.
    o = out_ref[...].astype(jnp.float32)
    t = lbl_ref[...].astype(jnp.float32)

    d = o - t
    d2 = d * d
    # Per-element loss: 3-4 VALU ops + 1 EUP exp, no divides.
    loss = c_mse * d2 + la * (1.0 - jnp.exp(d2 * neg_inv_two_sigma_sq))

    # Elementwise accumulate on the VPU; defer the cross-lane reduce.
    acc_ref[...] += loss

    @pl.when(i == pl.num_programs(0) - 1)
    def _finalize():
        # Single XLU reduction + scalar normalization in the epilogue.
        loss_ref[...] = jnp.sum(acc_ref[...], axis=(0, 1), keepdims=True) * inv_n


def age_loss(output, label, current_iter, total_iter, sigma=3.0,
             max_block_rows=256):
    """Pallas implementation of AgeLoss.forward. Returns a scalar float32."""
    assert max_block_rows % 8 == 0, "block rows must be sublane-aligned"

    out_flat = jnp.ravel(output)
    lbl_flat = jnp.ravel(label)
    assert out_flat.shape == lbl_flat.shape
    n = out_flat.shape[0]
    assert n > 0

    # Sublane/lane-dense layout: (rows, 128) with rows a multiple of 8,
    # further padded to a multiple of the block row count.
    rows = pl.cdiv(n, _LANES)
    rows = ((rows + 7) // 8) * 8
    block_rows = min(max_block_rows, rows)
    rows = ((rows + block_rows - 1) // block_rows) * block_rows
    n_padded = rows * _LANES

    pad = n_padded - n
    if pad:
        # Identical padding (zeros) in both arrays -> dif_squ == 0 -> both
        # loss terms contribute exactly 0 for padded elements.
        out_flat = jnp.pad(out_flat, (0, pad))
        lbl_flat = jnp.pad(lbl_flat, (0, pad))

    out2d = out_flat.reshape(rows, _LANES)   # native dtype, no wrapper f32 cast
    lbl2d = lbl_flat.reshape(rows, _LANES)

    num_blocks = rows // block_rows

    la = jnp.full((1,), current_iter / total_iter, dtype=jnp.float32)

    kernel = functools.partial(
        _age_loss_kernel,
        neg_inv_two_sigma_sq=-1.0 / (2.0 * float(sigma) ** 2),  # const-folded
        inv_n=1.0 / float(n),                                   # mean over real elems
    )

    bytes_accessed = int(out2d.size * out2d.dtype.itemsize
                         + lbl2d.size * lbl2d.dtype.itemsize + 4)

    # TODO(synk): on v7x a leading size-2 "parallel" grid axis with per-core
    # partial sums would stream half the HBM traffic per TensorCore.
    loss = pl.pallas_call(
        kernel,
        out_shape=jax.ShapeDtypeStruct((1, 1), jnp.float32),
        grid_spec=pltpu.PrefetchScalarGridSpec(
            num_scalar_prefetch=0,
            grid=(num_blocks,),
            in_specs=[
                pl.BlockSpec(memory_space=pltpu.MemorySpace.SMEM),      # la
                pl.BlockSpec((block_rows, _LANES), lambda i: (i, 0)),   # output
                pl.BlockSpec((block_rows, _LANES), lambda i: (i, 0)),   # label
            ],
            out_specs=pl.BlockSpec((1, 1), lambda i: (0, 0)),
            scratch_shapes=[pltpu.VMEM((block_rows, _LANES), jnp.float32)],
        ),
        compiler_params=pltpu.CompilerParams(
            dimension_semantics=("arbitrary",),  # accumulator axis
        ),
        cost_estimate=pl.CostEstimate(
            flops=6 * n_padded,
            transcendentals=n_padded,
            bytes_accessed=bytes_accessed,
        ),
    )(la, out2d, lbl2d)

    return loss[0, 0]


def _age_loss_ref(output, label, current_iter, total_iter, sigma=3.0):
    # Pure-JAX reference matching the PyTorch module semantics.
    o = jnp.asarray(output, jnp.float32)
    t = jnp.asarray(label, jnp.float32)
    la = current_iter / total_iter
    dif_squ = (o - t) ** 2
    loss = (1 - la) / 2 * dif_squ + la * (1 - jnp.exp(-dif_squ / (2 * sigma ** 2)))
    return jnp.mean(loss)


if __name__ == "__main__":
    key = jax.random.PRNGKey(0)
    k1, k2, k3, k4 = jax.random.split(key, 4)

    total_iter = 1000.0
    current_iter = 250.0
    sigma = 3.0

    # Case 1: SwinFace-realistic tiny age head output (one scalar per sample).
    batch = 8
    out1 = jax.random.uniform(k1, (batch,), jnp.float32, minval=0.0, maxval=100.0)
    lbl1 = jax.random.uniform(k2, (batch,), jnp.float32, minval=0.0, maxval=100.0)
    loss1 = jax.block_until_ready(age_loss(out1, lbl1, current_iter, total_iter, sigma))
    ref1 = jax.block_until_ready(_age_loss_ref(out1, lbl1, current_iter, total_iter, sigma))
    assert jnp.allclose(loss1, ref1, rtol=1e-4, atol=1e-5), (loss1, ref1)

    # Case 2: exercises the multi-tile accumulator path + tail padding
    # (deliberately small block so the grid has several steps).
    out2 = jax.random.normal(k3, (3, 1000), jnp.float32) * 10.0
    lbl2 = jax.random.normal(k4, (3, 1000), jnp.float32) * 10.0
    loss2 = jax.block_until_ready(
        age_loss(out2, lbl2, current_iter, total_iter, sigma, max_block_rows=8))
    ref2 = jax.block_until_ready(_age_loss_ref(out2, lbl2, current_iter, total_iter, sigma))
    assert jnp.allclose(loss2, ref2, rtol=1e-4, atol=1e-5), (loss2, ref2)

    # Case 3: half-precision inputs go through in native dtype (cast in-kernel).
    out3 = out2.astype(jnp.bfloat16)
    lbl3 = lbl2.astype(jnp.bfloat16)
    loss3 = jax.block_until_ready(age_loss(out3, lbl3, current_iter, total_iter, sigma))
    ref3 = jax.block_until_ready(_age_loss_ref(out3, lbl3, current_iter, total_iter, sigma))
    assert jnp.allclose(loss3, ref3, rtol=1e-4, atol=1e-5), (loss3, ref3)

    print("KERNEL_OK")
</pallas_src>

<mosaic_0001>
module attributes {stable_mosaic.version = 11 : i64} {
  func.func @_age_loss_kernel(%arg0: i32, %arg1: memref<1xf32, #tpu.memory_space<smem>>, %arg2: memref<8x128xf32, #tpu.memory_space<vmem>>, %arg3: memref<8x128xf32, #tpu.memory_space<vmem>>, %arg4: memref<1x1xf32, #tpu.memory_space<vmem>>, %arg5: memref<8x128xf32, #tpu.memory_space<vmem>>) attributes {dimension_semantics = [#tpu.dimension_semantics<arbitrary>], iteration_bounds = array<i64: 1>, scalar_prefetch = 0 : i64, scratch_operands = 1 : i64, tpu.core_type = #tpu.core_type<tc>, window_params = [{transform_indices = @transform_0, window_bounds = array<i64: 1>}, {transform_indices = @transform_1, window_bounds = array<i64: 8, 128>}, {transform_indices = @transform_2, window_bounds = array<i64: 8, 128>}, {pipeline_mode = #tpu.pipeline_mode<synchronous>, transform_indices = @transform_3, window_bounds = array<i64: 1, 1>}]} {
    %c0_i32 = arith.constant 0 : i32
    %0 = arith.cmpi eq, %arg0, %c0_i32 : i32
    %1 = arith.extui %0 : i1 to i32
    %c0_i32_0 = arith.constant 0 : i32
    %2 = arith.cmpi ne, %1, %c0_i32_0 : i32
    scf.if %2 {
      %cst_14 = arith.constant 0.000000e+00 : f32
      %26 = vector.broadcast %cst_14 : f32 to vector<8x128xf32>
      %c0_15 = arith.constant 0 : index
      %c0_16 = arith.constant 0 : index
      %27 = vector.load %arg5[%c0_15, %c0_16] : memref<8x128xf32, #tpu.memory_space<vmem>>, vector<8x128xf32>
      tpu.vector_store %arg5[%c0_15, %c0_16], %26 {strides = array<i32>} : memref<8x128xf32, #tpu.memory_space<vmem>>, vector<8x128xf32>,
    } else {
    }
    %c0 = arith.constant 0 : index
    %3 = memref.load %arg1[%c0] : memref<1xf32, #tpu.memory_space<smem>>
    %cst = arith.constant 1.000000e+00 : f32
    %4 = arith.subf %cst, %3 : f32
    %cst_1 = arith.constant 5.000000e-01 : f32
    %5 = arith.mulf %4, %cst_1 : f32
    %c0_2 = arith.constant 0 : index
    %c0_3 = arith.constant 0 : index
    %6 = vector.load %arg2[%c0_2, %c0_3] : memref<8x128xf32, #tpu.memory_space<vmem>>, vector<8x128xf32>
    %c0_4 = arith.constant 0 : index
    %c0_5 = arith.constant 0 : index
    %7 = vector.load %arg3[%c0_4, %c0_5] : memref<8x128xf32, #tpu.memory_space<vmem>>, vector<8x128xf32>
    %8 = arith.subf %6, %7 : vector<8x128xf32>
    %9 = arith.mulf %8, %8 : vector<8x128xf32>
    %10 = vector.broadcast %5 : f32 to vector<8x128xf32>
    %11 = arith.mulf %10, %9 : vector<8x128xf32>
    %cst_6 = arith.constant -0.055555556 : f32
    %12 = vector.broadcast %cst_6 : f32 to vector<8x128xf32>
    %13 = arith.mulf %9, %12 : vector<8x128xf32>
    %14 = math.exp %13 : vector<8x128xf32>
    %cst_7 = arith.constant 1.000000e+00 : f32
    %15 = vector.broadcast %cst_7 : f32 to vector<8x128xf32>
    %16 = arith.subf %15, %14 : vector<8x128xf32>
    %17 = vector.broadcast %3 : f32 to vector<8x128xf32>
    %18 = arith.mulf %17, %16 : vector<8x128xf32>
    %19 = arith.addf %11, %18 : vector<8x128xf32>
    %c0_8 = arith.constant 0 : index
    %c0_9 = arith.constant 0 : index
    %20 = vector.load %arg5[%c0_8, %c0_9] : memref<8x128xf32, #tpu.memory_space<vmem>>, vector<8x128xf32>
    %21 = arith.addf %20, %19 : vector<8x128xf32>
    %c0_10 = arith.constant 0 : index
    %c0_11 = arith.constant 0 : index
    %22 = vector.load %arg5[%c0_10, %c0_11] : memref<8x128xf32, #tpu.memory_space<vmem>>, vector<8x128xf32>
    tpu.vector_store %arg5[%c0_10, %c0_11], %21 {strides = array<i32>} : memref<8x128xf32, #tpu.memory_space<vmem>>, vector<8x128xf32>,
    %c0_i32_12 = arith.constant 0 : i32
    %23 = arith.cmpi eq, %arg0, %c0_i32_12 : i32
    %24 = arith.extui %23 : i1 to i32
    %c0_i32_13 = arith.constant 0 : i32
    %25 = arith.cmpi ne, %24, %c0_i32_13 : i32
    scf.if %25 {
      %c0_14 = arith.constant 0 : index
      %c0_15 = arith.constant 0 : index
      %26 = vector.load %arg5[%c0_14, %c0_15] : memref<8x128xf32, #tpu.memory_space<vmem>>, vector<8x128xf32>
      %27 = vector.shape_cast %26 : vector<8x128xf32> to vector<1x8x128xf32>
      %cst_16 = arith.constant dense<0.000000e+00> : vector<1xf32>
      %28 = vector.multi_reduction <add>, %27, %cst_16 [1, 2] : vector<1x8x128xf32> to vector<1xf32>
      %29 = vector.shape_cast %28 : vector<1xf32> to vector<1x1x1xf32>
      %30 = vector.extract %29[0, 0, 0] : f32 from vector<1x1x1xf32>
      %31 = vector.broadcast %30 : f32 to vector<1x1xf32>
      %cst_17 = arith.constant 1.250000e-01 : f32
      %32 = vector.broadcast %cst_17 : f32 to vector<1x1xf32>
      %33 = arith.mulf %31, %32 : vector<1x1xf32>
      %c0_18 = arith.constant 0 : index
      %c0_19 = arith.constant 0 : index
      %34 = vector.load %arg4[%c0_18, %c0_19] : memref<1x1xf32, #tpu.memory_space<vmem>>, vector<1x1xf32>
      tpu.vector_store %arg4[%c0_18, %c0_19], %33 {strides = array<i32>} : memref<1x1xf32, #tpu.memory_space<vmem>>, vector<1x1xf32>,
    } else {
    }
    return
  }
  func.func @transform_0(%arg0: i32) -> i32 {
    %c0_i32 = arith.constant 0 : i32
    %c0_i32_0 = arith.constant 0 : i32
    return %c0_i32 : i32
  }
  func.func @transform_1(%arg0: i32) -> (i32, i32) {
    %c0_i32 = arith.constant 0 : i32
    %c0_i32_0 = arith.constant 0 : i32
    return %arg0, %c0_i32 : i32, i32
  }
  func.func @transform_2(%arg0: i32) -> (i32, i32) {
    %c0_i32 = arith.constant 0 : i32
    %c0_i32_0 = arith.constant 0 : i32
    return %arg0, %c0_i32 : i32, i32
  }
  func.func @transform_3(%arg0: i32) -> (i32, i32) {
    %c0_i32 = arith.constant 0 : i32
    %c0_i32_0 = arith.constant 0 : i32
    %c0_i32_1 = arith.constant 0 : i32
    return %c0_i32, %c0_i32_0 : i32, i32
  }
}

</mosaic_0001>

<bundles_post_ra>
// kernel: tpu_custom_call.1
= control target key start
LH: loop header
LB: loop body
LE: loop exit
PB: predicated region body
PF: predicated region fallthrough
CT: control target
= control target key end

     0   :  { %9 = vsyncpa [#allocation5], 0  ;;  %s241_s0 = inlined_call_operand.<no memory space> [shape: f32[1], index: 0, kind: input, shape index: {}]   ;;  %s242_s1 = inlined_call_operand.hbm [shape: f32[8,128], index: 1, kind: input, shape index: {}]   ;;  %s243_s2 = inlined_call_operand.hbm [shape: f32[8,128], index: 2, kind: input, shape index: {}]   ;;  %s244_s3 = inlined_call_operand.hbm [shape: f32[1,1], index: 3, kind: output, shape index: {}]  }
   0x1   :  { %10 = vsyncpa [#allocation8], 0 }
   0x2   :  { %11 = vsyncpa [#allocation6], 0  ;;  %s176_s12 = smov [#allocation4]   ;;  %s177_s14 = smov [#allocation7]  }
   0x3   :  { %s20_s13 = sshll.u32 %s176_s12, 4  ;;  %s30_s15 = sshll.u32 %s177_s14, 4  ;;  %s21_s13 = int_to_ptr.vmem [resolvable:$true] %s20_s13  ;;  %s31_s15 = int_to_ptr.vmem [resolvable:$true] %s30_s15 }
   0x4   :  { %s104_s18 = scalar_lea.hbm %s242_s1, 128 }
   0x5   :  { %p105_p0 = scmp.ne.s32.totalorder %s242_s1, %s104_s18  ;;  %p108_p1 = scmp.lt.u32.totalorder %s104_s18, %s242_s1 }
   0x7   :  { %p110_p2 = pnand %p108_p1, %p105_p0 }
   0x9   :  { %113 = shalt.err (!%p110_p2)
}
   0xa   :  { %s114_s23 = scalar_lea.vmem %s21_s13, 128  ;;  %p119_p4 = scmp.lt.s32.totalorder %s21_s13, %s21_s13 }
   0xb   :  { %p115_p3 = scmp.ne.s32.totalorder %s21_s13, %s114_s23  ;;  %p120_p5 = scmp.lt.s32.totalorder %s114_s23, %s114_s23 }
   0xd   :  { %p121_p6 = por %p120_p5, %p119_p4 }
   0xf   :  { %p122_p7 = pnand %p121_p6, %p115_p3 }
  0x11   :  { %125 = shalt.err (!%p122_p7)
}
  0x12   :  { %23 = dma.hbm_to_vmem [thread:$0]  %s242_s1, 128, %s21_s13, [#allocation5]  }
  0x13   :  { %s126_s28 = scalar_lea.hbm %s243_s2, 128 }
  0x14   :  { %p127_p8 = scmp.ne.s32.totalorder %s243_s2, %s126_s28  ;;  %p130_p9 = scmp.lt.u32.totalorder %s126_s28, %s243_s2 }
  0x16   :  { %p132_p10 = pnand %p130_p9, %p127_p8 }
  0x18   :  { %135 = shalt.err (!%p132_p10)
}
  0x19   :  { %s136_s6 = scalar_lea.vmem %s31_s15, 128  ;;  %p141_p12 = scmp.lt.s32.totalorder %s31_s15, %s31_s15 }
  0x1a   :  { %p137_p11 = scmp.ne.s32.totalorder %s31_s15, %s136_s6  ;;  %p142_p13 = scmp.lt.s32.totalorder %s136_s6, %s136_s6 }
  0x1c   :  { %p143_p0 = por %p142_p13, %p141_p12 }
  0x1e   :  { %p144_p1 = pnand %p143_p0, %p137_p11 }
  0x20   :  { %147 = shalt.err (!%p144_p1)
}
  0x21   :  { %33 = dma.hbm_to_vmem [thread:$0]  %s243_s2, 128, %s31_s15, [#allocation8]  }
  0x22   :  { %170 = dma.done.wait [#allocation5], 128  }
  0x23   :  { %171 = vsyncadd [#allocation5], 4294967168 }
  0x24   :  { %172 = dma.done.wait [#allocation8], 128  }
  0x25   :  { %173 = vsyncadd [#allocation8], 4294967168  ;;  %v48_v0 = vld [vmem:[#allocation4] sm:$0xff]  ;;  %v49_v1 = vld [vmem:[#allocation7] sm:$0xff]  ;;  %s46_s10 = ssub.f32 1.0, %s241_s0  ;;  %v58_v8 = vstv %s241_s0  ;;  %s178_s13 = smov [#allocation9]  }
  0x26   :  { %v50_v2 = vsub.f32 %v48_v0, %v49_v1  ;;  %s87_s14 = sshll.u32 %s178_s13, 4  ;;  %vm79_vm0 = vcmask 0   ;;  %s88_s14 = int_to_ptr.vmem [resolvable:$true] %s87_s14 }
  0x27   :  { %s47_s11 = smul.f32 0.5, %s46_s10  ;;  %s148_s0 = scalar_lea.vmem %s88_s14, 16 }
  0x28   :  { %v51_v3 = vmul.f32 %v50_v2, %v50_v2  ;;  %p149_p2 = scmp.ne.s32.totalorder %s88_s14, %s148_s0  ;;  %s152_s16 = scalar_lea.vmem %s88_s14, 32 }
  0x29   :  { %v52_v6 = vstv %s47_s11  ;;  %p153_p3 = scmp.lt.s32.totalorder %s88_s14, %s88_s14  ;;  %p154_p4 = scmp.lt.s32.totalorder %s152_s16, %s148_s0 }
  0x2a   :  { %v54_v4 = vmul.f32 -0.055555556, %v51_v3  ;;  %v53_v9 = vmul.f32 %v52_v6, %v51_v3 }
  0x2b   :  { %p155_p5 = por %p154_p4, %p153_p3 }
  0x2c   :  { %v55_v5 = vmul.f32 1.442695, %v54_v4 }
  0x2d   :  { %p156_p6 = pnand %p155_p5, %p149_p2 }
  0x2e   :  { %102 = vpow2.f32 %v55_v5 }
  0x38   :  { %v103_v7 = vpop.eup %102 }
  0x39   :  { %v57_v10 = vsub.f32 1.0, %v103_v7 }
  0x3b   :  { %v59_v11 = vmul.f32 %v58_v8, %v57_v10 }
  0x3d   :  { %v60_v12 = vadd.f32 %v59_v11, %v53_v9 }
  0x3f   :  { %68 = vadd.xlane.f32.xlu0 %v60_v12 }
  0xcc   :  { %v69_v13 = vpop.xlane.xlu0 %68 }
  0xcd   :  { %v70_v14 = vrot.slane %v69_v13, 4 }
  0xcf   :  { %v71_v15 = vadd.f32 %v70_v14, %v69_v13 }
  0xd1   :  { %v72_v16 = vrot.slane %v71_v15, 2 }
  0xd3   :  { %v73_v17 = vadd.f32 %v72_v16, %v71_v15 }
  0xd5   :  { %v74_v18 = vrot.slane %v73_v17, 1 }
  0xd7   :  { %v75_v19 = vadd.f32 %v74_v18, %v73_v17 }
  0xd9   :  { %97 = vpush %v75_v19 }
 0x10a   :  { %s98_s15 = spop %97 }
 0x10b   :  { %v77_v20 = vstv %s98_s15 }
 0x10c   :  { %v78_v21 = vmul.f32 0.125, %v77_v20 }
 0x10e   :  { %80 = vst.msk [vmem:[#allocation9] sm:$0x1] %vm79_vm0, %v78_v21 }
 0x10f   :  { %159 = shalt.err (!%p156_p6)
}
 0x110   :  { %s160_s19 = scalar_lea.hbm %s244_s3, 16 }
 0x111   :  { %p161_p7 = scmp.ne.s32.totalorder %s244_s3, %s160_s19  ;;  %p164_p8 = scmp.lt.u32.totalorder %s160_s19, %s244_s3 }
 0x113   :  { %p166_p9 = pnand %p164_p8, %p161_p7 }
 0x115   :  { %169 = shalt.err (!%p166_p9)
}
 0x116   :  { %90 = dma.vmem_to_hbm [thread:$0]  %s88_s14, 16, %s244_s3, [#allocation6]  }
 0x117   :  { %174 = dma.done.wait [#allocation6], 16  }
 0x118   :  { %175 = vsyncadd [#allocation6], 4294967280 }
 0x119   :  { %94 = vsyncpa [#allocation5], 1 }
 0x11a   :  { %95 = vsyncpa [#allocation8], 1 }
 0x11b   :  { %96 = vsyncpa [#allocation6], 1 }

</bundles_post_ra>
